<compile_context>
chip_gen: v5e
topology: v5e:2x2
jax: 0.10.0
libtpu: 0.0.40
codegen_flags: <defaults>
</compile_context>

<pallas_src>
import functools
import math

import jax
import jax.numpy as jnp
from jax.experimental import pallas as pl
from jax.experimental.pallas import tpu as pltpu

_LOG_2PI = math.log(2.0 * math.pi)
_VMEM = pl.BlockSpec(memory_space=pltpu.MemorySpace.VMEM)


def _softplus(x):
    # matches torch.nn.functional.softplus(x, beta=1, threshold=20)
    return jnp.where(x > 20.0, x, jnp.log1p(jnp.exp(jnp.minimum(x, 20.0))))


# ----------------------------------------------------------------------------
# Kernels
# ----------------------------------------------------------------------------
def _fused_sample_kernel(x_ref,
                         wmu1_ref, wp1_ref, bmu1_ref, bp1_ref,
                         wmu2_ref, wp2_ref, bmu2_ref, bp2_ref,
                         wmu3_ref, wp3_ref, bmu3_ref, bp3_ref,
                         ew1_ref, eb1_ref, ew2_ref, eb2_ref, ew3_ref, eb3_ref,
                         y_ref, lqw_ref, lpw_ref,
                         *, prior_mu, prior_sigma):
    """One grid step == one Monte-Carlo weight sample (whole 3-layer forward)."""
    neg_half_log_2pi = -0.5 * _LOG_2PI
    log_prior_sigma = math.log(prior_sigma)
    half_inv_prior_var = 0.5 / (prior_sigma * prior_sigma)

    def bayes_layer(h, wmu_ref, wp_ref, bmu_ref, bp_ref, ew_ref, eb_ref, relu):
        wmu = wmu_ref[...]
        bmu = bmu_ref[...]
        eps_w = ew_ref[0]                       # (n_in, n_out)
        eps_b = eb_ref[0]                       # (1, n_out)

        # std = 1e-6 + softplus(p);  W = mu + std * eps
        std_w = 1e-6 + _softplus(wp_ref[...])
        std_b = 1e-6 + _softplus(bp_ref[...])
        w = wmu + std_w * eps_w
        b = bmu + std_b * eps_b

        out = jnp.dot(h, w, preferred_element_type=jnp.float32) + b
        if relu:
            out = jnp.maximum(out, 0.0)

        n_in, n_out = wmu.shape
        n_el = float(n_in * n_out + n_out)

        # log q(W|theta): (W - mu)/std == eps, so no reload of W / mu is needed.
        lqw = (n_el * neg_half_log_2pi
               - jnp.sum(jnp.log(std_w)) - jnp.sum(jnp.log(std_b))
               - 0.5 * (jnp.sum(eps_w * eps_w) + jnp.sum(eps_b * eps_b)))

        # log p(W) under isotropic Gaussian prior; constants folded at trace time.
        if prior_mu == 0.0:                     # trace-time specialization
            sq = jnp.sum(w * w) + jnp.sum(b * b)
        else:
            dw = w - prior_mu
            db = b - prior_mu
            sq = jnp.sum(dw * dw) + jnp.sum(db * db)
        lpw = n_el * (neg_half_log_2pi - log_prior_sigma) - half_inv_prior_var * sq
        return out, lqw, lpw

    h = x_ref[...]
    h, lqw1, lpw1 = bayes_layer(h, wmu1_ref, wp1_ref, bmu1_ref, bp1_ref,
                                ew1_ref, eb1_ref, True)
    h, lqw2, lpw2 = bayes_layer(h, wmu2_ref, wp2_ref, bmu2_ref, bp2_ref,
                                ew2_ref, eb2_ref, True)
    y, lqw3, lpw3 = bayes_layer(h, wmu3_ref, wp3_ref, bmu3_ref, bp3_ref,
                                ew3_ref, eb3_ref, False)

    y_ref[0] = y.astype(y_ref.dtype)
    lqw_ref[...] = jnp.reshape(lqw1 + lqw2 + lqw3, (1, 1, 1))
    lpw_ref[...] = jnp.reshape(lpw1 + lpw2 + lpw3, (1, 1, 1))


def _fused_det_kernel(x_ref, wmu1_ref, bmu1_ref, wmu2_ref, bmu2_ref,
                      wmu3_ref, bmu3_ref, y_ref):
    h = jnp.dot(x_ref[...], wmu1_ref[...], preferred_element_type=jnp.float32) + bmu1_ref[...]
    h = jnp.maximum(h, 0.0)
    h = jnp.dot(h, wmu2_ref[...], preferred_element_type=jnp.float32) + bmu2_ref[...]
    h = jnp.maximum(h, 0.0)
    y = jnp.dot(h, wmu3_ref[...], preferred_element_type=jnp.float32) + bmu3_ref[...]
    y_ref[...] = y.astype(y_ref.dtype)


# ----------------------------------------------------------------------------
# Wrappers
# ----------------------------------------------------------------------------
def _tpu_compiler_params():
    # "parallel" sample axis -> v7x megacore shards MC samples across its 2 TCs.
    # Guarded so the CPU Pallas interpreter path is unaffected.
    if jax.default_backend() == "tpu":
        return pltpu.CompilerParams(dimension_semantics=("parallel",))
    return None


def _draw_eps(key, params, n_samples):
    keys = jax.random.split(key, 2 * len(params))
    eps = []
    for li, p in enumerate(params):
        n_in, n_out = p["W_mu"].shape
        eps.append(jax.random.normal(keys[2 * li], (n_samples, n_in, n_out), jnp.float32))
        eps.append(jax.random.normal(keys[2 * li + 1], (n_samples, 1, n_out), jnp.float32))
    return eps


def _sampled_forward(x, params, eps, *, prior_mu, prior_sigma):
    batch = x.shape[0]
    output_dim = params[2]["W_mu"].shape[1]
    n_samples = eps[0].shape[0]

    flat_params, param_specs = [], []
    for p in params:
        for name in ("W_mu", "W_p", "b_mu", "b_p"):
            arr = p[name]
            flat_params.append(arr)
            # constant index_map -> block resident in VMEM, DMA'd once
            param_specs.append(pl.BlockSpec(arr.shape, lambda s: (0, 0)))

    eps_specs = [pl.BlockSpec((1,) + e.shape[1:], lambda s: (s, 0, 0)) for e in eps]

    kernel = functools.partial(_fused_sample_kernel,
                               prior_mu=float(prior_mu),
                               prior_sigma=float(prior_sigma))

    y, lqw, lpw = pl.pallas_call(
        kernel,
        grid=(n_samples,),
        in_specs=[pl.BlockSpec(x.shape, lambda s: (0, 0))] + param_specs + eps_specs,
        out_specs=(
            pl.BlockSpec((1, batch, output_dim), lambda s: (s, 0, 0)),
            pl.BlockSpec((1, 1, 1), lambda s: (s, 0, 0)),
            pl.BlockSpec((1, 1, 1), lambda s: (s, 0, 0)),
        ),
        out_shape=(
            jax.ShapeDtypeStruct((n_samples, batch, output_dim), jnp.float32),
            jax.ShapeDtypeStruct((n_samples, 1, 1), jnp.float32),
            jax.ShapeDtypeStruct((n_samples, 1, 1), jnp.float32),
        ),
        compiler_params=_tpu_compiler_params(),
    )(x, *flat_params, *eps)
    return y, lqw[:, 0, 0], lpw[:, 0, 0]


def init_bayes_linear(key, n_in, n_out):
    k1, k2, k3, k4 = jax.random.split(key, 4)
    return dict(
        W_mu=jax.random.uniform(k1, (n_in, n_out), jnp.float32, -0.1, 0.1),
        W_p=jax.random.uniform(k2, (n_in, n_out), jnp.float32, -3.0, -2.0),
        # biases stored as (1, n_out): no per-call reshape needed
        b_mu=jax.random.uniform(k3, (1, n_out), jnp.float32, -0.1, 0.1),
        b_p=jax.random.uniform(k4, (1, n_out), jnp.float32, -3.0, -2.0),
    )


def init_bayes_linear_2L(key, input_dim, n_hid, output_dim):
    k1, k2, k3 = jax.random.split(key, 3)
    return [
        init_bayes_linear(k1, input_dim, n_hid),
        init_bayes_linear(k2, n_hid, n_hid),
        init_bayes_linear(k3, n_hid, output_dim),
    ]


def bayes_linear_2L_forward(x, params, input_dim, *, sample=False, training=True,
                            key=None, prior_mu=0.0, prior_sigma=0.1):
    x = x.reshape(-1, input_dim).astype(jnp.float32)
    batch = x.shape[0]
    output_dim = params[2]["W_mu"].shape[1]

    if (not training) and (not sample):
        # Deterministic eval path: y = relu(relu(X W1 + b1) W2 + b2) W3 + b3
        y = pl.pallas_call(
            _fused_det_kernel,
            out_shape=jax.ShapeDtypeStruct((batch, output_dim), jnp.float32),
            in_specs=[_VMEM] * 7,
            out_specs=_VMEM,
        )(x,
          params[0]["W_mu"], params[0]["b_mu"],
          params[1]["W_mu"], params[1]["b_mu"],
          params[2]["W_mu"], params[2]["b_mu"])
        return y, jnp.float32(0.0), jnp.float32(0.0)

    assert key is not None, "sampling path requires a PRNG key"
    eps = _draw_eps(key, params, 1)
    y, lqw, lpw = _sampled_forward(x, params, eps,
                                   prior_mu=prior_mu, prior_sigma=prior_sigma)
    return y[0], lqw[0], lpw[0]


def bayes_linear_2L_sample_predict(x, params, input_dim, n_samples, key,
                                   *, prior_mu=0.0, prior_sigma=0.1):
    """All Nsamples MC forwards in ONE gridded pallas_call (amortized launch/DMA)."""
    x = x.reshape(-1, input_dim).astype(jnp.float32)
    eps = _draw_eps(key, params, n_samples)
    return _sampled_forward(x, params, eps, prior_mu=prior_mu, prior_sigma=prior_sigma)


# ----------------------------------------------------------------------------
# Pure-JAX reference (for correctness checking only)
# ----------------------------------------------------------------------------
def _reference_sampled(x, params, eps, prior_mu, prior_sigma):
    def gauss_ll(v, mu, sig):
        return jnp.sum(-0.5 * _LOG_2PI - jnp.log(sig) - 0.5 * ((v - mu) / sig) ** 2)

    n_samples = eps[0].shape[0]
    ys, lqws, lpws = [], [], []
    for s in range(n_samples):
        h = x
        tlqw = jnp.float32(0.0)
        tlpw = jnp.float32(0.0)
        for li, p in enumerate(params):
            ew = eps[2 * li][s]
            eb = eps[2 * li + 1][s]
            std_w = 1e-6 + _softplus(p["W_p"])
            std_b = 1e-6 + _softplus(p["b_p"])
            W = p["W_mu"] + std_w * ew
            b = p["b_mu"] + std_b * eb
            h = jnp.dot(h, W, precision=jax.lax.Precision.HIGHEST) + b
            if li < 2:
                h = jnp.maximum(h, 0.0)
            tlqw = tlqw + gauss_ll(W, p["W_mu"], std_w) + gauss_ll(b, p["b_mu"], std_b)
            tlpw = tlpw + gauss_ll(W, prior_mu, prior_sigma) + gauss_ll(b, prior_mu, prior_sigma)
        ys.append(h)
        lqws.append(tlqw)
        lpws.append(tlpw)
    return jnp.stack(ys), jnp.stack(lqws), jnp.stack(lpws)


# ----------------------------------------------------------------------------
if __name__ == "__main__":
    input_dim, n_hid, output_dim = 32, 64, 16
    batch = 8
    n_samples = 4

    root = jax.random.PRNGKey(0)
    k_x, k_params, k_sample = jax.random.split(root, 3)

    x = jax.random.normal(k_x, (batch, input_dim), jnp.float32)
    params = init_bayes_linear_2L(k_params, input_dim, n_hid, output_dim)

    fwd_det = jax.jit(lambda xx, pp: bayes_linear_2L_forward(
        xx, pp, input_dim, sample=False, training=False))
    fwd_smp = jax.jit(lambda xx, pp, kk: bayes_linear_2L_forward(
        xx, pp, input_dim, sample=True, training=True, key=kk))
    fwd_mc = jax.jit(lambda xx, pp, kk: bayes_linear_2L_sample_predict(
        xx, pp, input_dim, n_samples, kk))

    # Deterministic (eval, sample=False) path.
    y_det, lq0, lp0 = fwd_det(x, params)
    # Single-sample training path.
    y_smp, tlqw, tlpw = fwd_smp(x, params, k_sample)
    # Monte-Carlo sample_predict path: all samples in one gridded pallas_call.
    y_mc, lqw_mc, lpw_mc = fwd_mc(x, params, k_sample)
    jax.block_until_ready((y_det, y_smp, tlqw, tlpw, y_mc, lqw_mc, lpw_mc))

    # ---- correctness checks against pure-JAX references ---------------------
    y_det_ref = x
    for li, p in enumerate(params):
        y_det_ref = jnp.dot(y_det_ref, p["W_mu"],
                            precision=jax.lax.Precision.HIGHEST) + p["b_mu"]
        if li < 2:
            y_det_ref = jnp.maximum(y_det_ref, 0.0)
    assert bool(jnp.allclose(y_det, y_det_ref, rtol=2e-2, atol=2e-2))

    eps_mc = _draw_eps(k_sample, params, n_samples)
    y_ref, lqw_ref, lpw_ref = _reference_sampled(x, params, eps_mc, 0.0, 0.1)
    assert y_mc.shape == (n_samples, batch, output_dim)
    assert bool(jnp.allclose(y_mc, y_ref, rtol=2e-2, atol=2e-2))
    assert bool(jnp.allclose(lqw_mc, lqw_ref, rtol=1e-3, atol=1.0))
    assert bool(jnp.allclose(lpw_mc, lpw_ref, rtol=1e-3, atol=1.0))

    assert y_det.shape == (batch, output_dim)
    assert y_smp.shape == (batch, output_dim)
    assert bool(jnp.isfinite(tlqw)) and bool(jnp.isfinite(tlpw))
    print("KERNEL_OK")
</pallas_src>

<mosaic_0001>
module attributes {stable_mosaic.version = 11 : i64} {
  func.func @_fused_det_kernel(%arg0: memref<8x32xf32, #tpu.memory_space<vmem>>, %arg1: memref<32x64xf32, #tpu.memory_space<vmem>>, %arg2: memref<1x64xf32, #tpu.memory_space<vmem>>, %arg3: memref<64x64xf32, #tpu.memory_space<vmem>>, %arg4: memref<1x64xf32, #tpu.memory_space<vmem>>, %arg5: memref<64x16xf32, #tpu.memory_space<vmem>>, %arg6: memref<1x16xf32, #tpu.memory_space<vmem>>, %arg7: memref<8x16xf32, #tpu.memory_space<vmem>>) attributes {dimension_semantics = [], scalar_prefetch = 0 : i64, scratch_operands = 0 : i64, tpu.core_type = #tpu.core_type<tc>} {
    %c0 = arith.constant 0 : index
    %c0_0 = arith.constant 0 : index
    %0 = vector.load %arg0[%c0, %c0_0] : memref<8x32xf32, #tpu.memory_space<vmem>>, vector<8x32xf32>
    %c0_1 = arith.constant 0 : index
    %c0_2 = arith.constant 0 : index
    %1 = vector.load %arg1[%c0_1, %c0_2] : memref<32x64xf32, #tpu.memory_space<vmem>>, vector<32x64xf32>
    %cst = arith.constant dense<0.000000e+00> : vector<8x64xf32>
    %2 = tpu.matmul %0, %1, %cst {dimension_numbers = #tpu.dot_dimension_numbers<[1], [0], [0], [1], [0, 0, 1, 1], [], []>} : vector<8x32xf32>, vector<32x64xf32>, vector<8x64xf32> -> vector<8x64xf32>
    %c0_3 = arith.constant 0 : index
    %c0_4 = arith.constant 0 : index
    %3 = vector.load %arg2[%c0_3, %c0_4] : memref<1x64xf32, #tpu.memory_space<vmem>>, vector<1x64xf32>
    %4 = vector.broadcast %3 : vector<1x64xf32> to vector<8x64xf32>
    %5 = arith.addf %2, %4 : vector<8x64xf32>
    %cst_5 = arith.constant 0.000000e+00 : f32
    %6 = vector.broadcast %cst_5 : f32 to vector<8x64xf32>
    %7 = arith.maximumf %5, %6 : vector<8x64xf32>
    %c0_6 = arith.constant 0 : index
    %c0_7 = arith.constant 0 : index
    %8 = vector.load %arg3[%c0_6, %c0_7] : memref<64x64xf32, #tpu.memory_space<vmem>>, vector<64x64xf32>
    %cst_8 = arith.constant dense<0.000000e+00> : vector<8x64xf32>
    %9 = tpu.matmul %7, %8, %cst_8 {dimension_numbers = #tpu.dot_dimension_numbers<[1], [0], [0], [1], [0, 0, 1, 1], [], []>} : vector<8x64xf32>, vector<64x64xf32>, vector<8x64xf32> -> vector<8x64xf32>
    %c0_9 = arith.constant 0 : index
    %c0_10 = arith.constant 0 : index
    %10 = vector.load %arg4[%c0_9, %c0_10] : memref<1x64xf32, #tpu.memory_space<vmem>>, vector<1x64xf32>
    %11 = vector.broadcast %10 : vector<1x64xf32> to vector<8x64xf32>
    %12 = arith.addf %9, %11 : vector<8x64xf32>
    %cst_11 = arith.constant 0.000000e+00 : f32
    %13 = vector.broadcast %cst_11 : f32 to vector<8x64xf32>
    %14 = arith.maximumf %12, %13 : vector<8x64xf32>
    %c0_12 = arith.constant 0 : index
    %c0_13 = arith.constant 0 : index
    %15 = vector.load %arg5[%c0_12, %c0_13] : memref<64x16xf32, #tpu.memory_space<vmem>>, vector<64x16xf32>
    %cst_14 = arith.constant dense<0.000000e+00> : vector<8x16xf32>
    %16 = tpu.matmul %14, %15, %cst_14 {dimension_numbers = #tpu.dot_dimension_numbers<[1], [0], [0], [1], [0, 0, 1, 1], [], []>} : vector<8x64xf32>, vector<64x16xf32>, vector<8x16xf32> -> vector<8x16xf32>
    %c0_15 = arith.constant 0 : index
    %c0_16 = arith.constant 0 : index
    %17 = vector.load %arg6[%c0_15, %c0_16] : memref<1x16xf32, #tpu.memory_space<vmem>>, vector<1x16xf32>
    %18 = vector.broadcast %17 : vector<1x16xf32> to vector<8x16xf32>
    %19 = arith.addf %16, %18 : vector<8x16xf32>
    %c0_17 = arith.constant 0 : index
    %c0_18 = arith.constant 0 : index
    %20 = vector.load %arg7[%c0_17, %c0_18] : memref<8x16xf32, #tpu.memory_space<vmem>>, vector<8x16xf32>
    tpu.vector_store %arg7[%c0_17, %c0_18], %19 {strides = array<i32>} : memref<8x16xf32, #tpu.memory_space<vmem>>, vector<8x16xf32>,
    return
  }
}

</mosaic_0001>

<bundles_post_ra>
// kernel: _lambda_.1
= control target key start
LH: loop header
LB: loop body
LE: loop exit
PB: predicated region body
PF: predicated region fallthrough
CT: control target
= control target key end

     0   :  { %12 = vsyncpa [#allocation3], 0  ;;  %s340_s0 = inlined_call_operand.vmem [shape: f32[8,32], index: 0, kind: input, shape index: {}]   ;;  %s341_s1 = inlined_call_operand.hbm [shape: f32[32,64], index: 1, kind: input, shape index: {}]   ;;  %s342_s2 = inlined_call_operand.vmem [shape: f32[1,64], index: 2, kind: input, shape index: {}]   ;;  %s343_s3 = inlined_call_operand.vmem [shape: f32[64,64], index: 3, kind: input, shape index: {}]   ;;  %s344_s4 = inlined_call_operand.vmem [shape: f32[1,64], index: 4, kind: input, shape index: {}]   ;;  %s345_s5 = inlined_call_operand.vmem [shape: f32[64,16], index: 5, kind: input, shape index: {}]   ;;  %s346_s6 = inlined_call_operand.vmem [shape: f32[1,16], index: 6, kind: input, shape index: {}]   ;;  %s347_s7 = inlined_call_operand.hbm [shape: f32[8,16], index: 7, kind: output, shape index: {}]  }
   0x1   :  { %13 = vsyncpa [#allocation4], 0  ;;  %s20_s26 = sshll.u32 %s341_s1, 4  ;;  %s230_s27 = smov [#allocation2]   ;;  %s21_s26 = int_to_ptr.hbm [resolvable:$true] %s20_s26 }
   0x2   :  { %s22_s28 = sshll.u32 %s230_s27, 4  ;;  %s231_s29 = smov 128   ;;  %s23_s28 = int_to_ptr.vmem [resolvable:$true] %s22_s28 }
   0x3   :  { %s232_s30 = smov 8  }
   0x4   :  { %28 = dma.hbm_to_vmem [thread:$0]  %s21_s26, 512, %s23_s28, [#allocation3], %s231_s29, %s231_s29, %s232_s30  }
   0x5   :  { %226 = dma.done.wait [#allocation3], 512  }
   0x6   :  { %227 = vsyncadd [#allocation3], 4294966784  ;;  %v47_v0 = vld [vmem:[#allocation2 + $0x18] sm:$0xff]  ;;  %v46_v1 = vld [vmem:[#allocation2 + $0x10] sm:$0xff]  ;;  %vm52_vm0 = vcmask 261120   ;;  %vm89_vm1 = vcmask 523264  }
   0x7   :  { %68 = vmatpush.msra.mxu0 %v47_v0  ;;  %v84_v2 = vld [vmem:[%s343_s3 + $0x38] sm:$0xff]  ;;  %v45_v3 = vld [vmem:[#allocation2 + $0x8] sm:$0xff]  ;;  %v83_v4 = vld [vmem:[%s343_s3 + $0x30] sm:$0xff]  ;;  %s233_s20 = smov [#allocation5]   ;;  %s158_s23 = sshll.u32 %s347_s7, 4  ;;  %vm149_vm2 = vcmask 130048   ;;  %s159_s23 = int_to_ptr.hbm [resolvable:$true] %s158_s23 }
   0x8   :  { %101 = vmatpush.msra.mxu1 %v84_v2  ;;  %v82_v5 = vld [vmem:[%s343_s3 + $0x28] sm:$0xff]  ;;  %v44_v6 = vld [vmem:[#allocation2] sm:$0xff]  ;;  %v80_v9 = vld [vmem:[%s343_s3 + $0x18] sm:$0xff] }
   0x9   :  { %69 = vmatpush.msra.mxu0 %v46_v1  ;;  %v43_v7 = vld [vmem:[%s340_s0] sm:$0xff]  ;;  %v79_v10 = vld [vmem:[%s343_s3 + $0x10] sm:$0xff]  ;;  %v78_v11 = vld [vmem:[%s343_s3 + $0x8] sm:$0xff]  ;;  %s156_s0 = sshll.u32 %s233_s20, 4  ;;  %s157_s0 = int_to_ptr.vmem [resolvable:$true] %s156_s0 }
   0xa   :  { %102 = vmatpush.msra.mxu1 %v83_v4  ;;  %v81_v8 = vld [vmem:[%s343_s3 + $0x20] sm:$0xff]  ;;  %v121_v13 = vld [vmem:[%s345_s5 + $0x38] sm:$0xff]  ;;  %v120_v14 = vld [vmem:[%s345_s5 + $0x30] sm:$0xff] }
   0xb   :  { %70 = vmatpush.msra.mxu0 %v45_v3  ;;  %v77_v12 = vld [vmem:[%s343_s3] sm:$0xff]  ;;  %137 = vmatpush.msra.mxu2 %v121_v13  ;;  %v119_v15 = vld [vmem:[%s345_s5 + $0x28] sm:$0xff]  ;;  %v117_v17 = vld [vmem:[%s345_s5 + $0x18] sm:$0xff] }
   0xc   :  { %103 = vmatpush.msra.mxu1 %v82_v5  ;;  %v118_v16 = vld [vmem:[%s345_s5 + $0x20] sm:$0xff]  ;;  %v116_v22 = vld [vmem:[%s345_s5 + $0x10] sm:$0xff]  ;;  %v115_v23 = vld [vmem:[%s345_s5 + $0x8] sm:$0xff] }
   0xd   :  { %71 = vmatpush.msra.mxu0 %v44_v6  ;;  %138 = vmatpush.msra.mxu2 %v120_v14  ;;  %v175_v18 = vld [vmem:[%s342_s2] ss:$0 sm:$0xff] }
   0xe   :  { %168 = vmatmul.msk.f32.vlgmr.msra.gmra.mxu0 %vm52_vm0, %v43_v7  ;;  %104 = vmatpush.msra.mxu1 %v81_v8  ;;  %v114_v24 = vld [vmem:[%s345_s5] sm:$0xff] }
   0xf   :  { %139 = vmatpush.msra.mxu2 %v119_v15  ;;  %v176_v25 = vld [vmem:[%s344_s4] ss:$0 sm:$0xff] }
  0x10   :  { %105 = vmatpush.msra.mxu1 %v80_v9  ;;  %v177_v29 = vld [vmem:[%s346_s6] ss:$0 sm:$0xff] }
  0x11   :  { %140 = vmatpush.msra.mxu2 %v118_v16 }
  0x12   :  { %106 = vmatpush.msra.mxu1 %v79_v10 }
  0x13   :  { %141 = vmatpush.msra.mxu2 %v117_v17 }
  0x14   :  { %107 = vmatpush.msra.mxu1 %v78_v11 }
  0x15   :  { %142 = vmatpush.msra.mxu2 %v116_v22 }
  0x16   :  { %108 = vmatpush.msra.mxu1 %v77_v12 }
  0x17   :  { %143 = vmatpush.msra.mxu2 %v115_v23 }
  0x19   :  { %144 = vmatpush.msra.mxu2 %v114_v24 }
  0x8b   :  { %v73_v19 = vpop.f32.mrf.mxu0 }
  0x8c   :  { %v74_v20 = vadd.f32 %v175_v18, %v73_v19 }
  0x8e   :  { %v76_v21 = vmax.f32 %v74_v20, 0.0 }
  0x90   :  { %169 = vmatmul.msk.f32.vlgmr.msra.gmra.mxu1 %vm89_vm1, %v76_v21 }
 0x10d   :  { %v110_v26 = vpop.f32.mrf.mxu1 }
 0x10e   :  { %v111_v27 = vadd.f32 %v176_v25, %v110_v26 }
 0x110   :  { %v113_v28 = vmax.f32 %v111_v27, 0.0 }
 0x112   :  { %170 = vmatmul.msk.f32.vlgmr.msra.gmra.mxu2 %vm89_vm1, %v113_v28 }
 0x195   :  { %v146_v30 = vpop.f32.mrf.mxu2 }
 0x196   :  { %v147_v31 = vadd.f32 %v177_v29, %v146_v30 }
 0x198   :  { %150 = vst.msk [vmem:[#allocation5] sm:$0xff] %vm149_vm2, %v147_v31 }
 0x199   :  { %161 = dma.vmem_to_hbm [thread:$0]  %s157_s0, 128, %s159_s23, [#allocation4]  }
 0x19a   :  { %228 = dma.done.wait [#allocation4], 128  }
 0x19b   :  { %229 = vsyncadd [#allocation4], 4294967168 }
 0x19c   :  { %166 = vsyncpa [#allocation3], 1 }
 0x19d   :  { %167 = vsyncpa [#allocation4], 1 }

</bundles_post_ra>
